<compile_context>
chip_gen: v7x
topology: tpu7x:2x2x1
jax: 0.10.0
libtpu: 0.0.40
codegen_flags: <defaults>
</compile_context>

<pallas_src>
import functools

import jax
import jax.numpy as jnp
import numpy as np
from jax.experimental import pallas as pl
from jax.experimental.pallas import tpu as pltpu


def _focal_loss_kernel(logits_ref, tgt_ref, alpha_ref, out_ref, *,
                       gamma, n_valid, tile_m, size_average):
    """logits_ref: (C, TM) f32, tgt_ref: (1, TM) i32, alpha_ref: (C, 1) f32."""
    i = pl.program_id(0)

    @pl.when(i == 0)
    def _init():
        out_ref[...] = jnp.zeros_like(out_ref)

    x = logits_ref[...]                                   # (C, TM)
    t = tgt_ref[...]                                      # (1, TM) int32

    # log_softmax over the class (sublane) axis.
    m = jnp.max(x, axis=0, keepdims=True)
    z = x - m
    lse = jnp.log(jnp.sum(jnp.exp(z), axis=0, keepdims=True))
    logp = z - lse                                        # (C, TM)

    # logpt.gather(1, target) as a one-hot select (lane-dense, no XLU gather).
    cls = jax.lax.broadcasted_iota(jnp.int32, logp.shape, 0)
    onehot = (cls == t).astype(jnp.float32)               # (C, TM)
    logpt = jnp.sum(logp * onehot, axis=0, keepdims=True)  # (1, TM)
    pt = jnp.exp(logpt)                                    # before alpha scaling

    # alpha.gather(0, target) via the same one-hot (alpha==None -> ones vector).
    at = jnp.sum(alpha_ref[...] * onehot, axis=0, keepdims=True)
    logpt = logpt * at

    # (1 - pt) ** gamma -- gamma is a static hyperparameter.
    if gamma == 0:
        focal = jnp.ones_like(pt)
    elif float(gamma).is_integer():
        focal = (1.0 - pt) ** int(gamma)                   # exact integer pow
    else:
        focal = jnp.power(jnp.maximum(1.0 - pt, 0.0), float(gamma))

    loss = -focal * logpt                                  # (1, TM)

    # Mask out the padding columns (M was padded up to a tile multiple).
    col = jax.lax.broadcasted_iota(jnp.int32, loss.shape, 1) + i * tile_m
    loss = jnp.where(col < n_valid, loss, 0.0)

    out_ref[...] = out_ref[...] + jnp.sum(loss)

    @pl.when(i == pl.num_programs(0) - 1)
    def _finalize():
        if size_average:
            out_ref[...] = out_ref[...] * (1.0 / float(n_valid))


def focal_loss(logits, target, gamma=0.0, alpha=None, size_average=True,
               tile_m=2048):
    """logits: (N, C, *spatial) float32, target: (N, *spatial) int -> scalar."""
    N, C = logits.shape[0], logits.shape[1]

    # PyTorch: view(N, C, -1) -> transpose(1, 2) -> view(-1, C).  Here we put
    # the flattened sample axis on lanes (classes on sublanes): (C, M).
    x = logits.reshape(N, C, -1)
    x = jnp.transpose(x, (1, 0, 2)).reshape(C, -1).astype(jnp.float32)
    t = target.reshape(1, -1).astype(jnp.int32)
    M = x.shape[1]

    if alpha is None:
        alpha_vec = jnp.ones((C, 1), jnp.float32)          # identity weighting
    else:
        if isinstance(alpha, (float, int)):
            alpha = [float(alpha), 1.0 - float(alpha)]     # module's scalar path
        alpha_vec = jnp.asarray(alpha, jnp.float32).reshape(C, 1)

    # Lane tile size: multiple of 128, as big as the problem allows.
    tm = min(int(tile_m), max(128, M))
    tm = max(128, (tm // 128) * 128)
    m_pad = ((M + tm - 1) // tm) * tm
    if m_pad != M:
        x = jnp.pad(x, ((0, 0), (0, m_pad - M)))
        t = jnp.pad(t, ((0, 0), (0, m_pad - M)))

    kernel = functools.partial(_focal_loss_kernel, gamma=gamma, n_valid=M,
                               tile_m=tm, size_average=size_average)

    out = pl.pallas_call(
        kernel,
        out_shape=jax.ShapeDtypeStruct((1, 1), jnp.float32),
        grid_spec=pltpu.PrefetchScalarGridSpec(
            num_scalar_prefetch=0,
            grid=(m_pad // tm,),
            in_specs=[pl.BlockSpec((C, tm), lambda i: (0, i)),
                      pl.BlockSpec((1, tm), lambda i: (0, i)),
                      pl.BlockSpec((C, 1), lambda i: (0, 0))],
            out_specs=pl.BlockSpec((1, 1), lambda i: (0, 0)),
        ),
        compiler_params=pltpu.CompilerParams(
            dimension_semantics=("arbitrary",),
            vmem_limit_bytes=64 * 1024 * 1024),
    )(x, t, alpha_vec)
    return out[0, 0]


def focal_loss_reference(logits, target, gamma=0.0, alpha=None,
                         size_average=True):
    """Pure-JAX mirror of the PyTorch module (for correctness checking)."""
    N, C = logits.shape[0], logits.shape[1]
    x = logits.reshape(N, C, -1)
    x = jnp.transpose(x, (0, 2, 1)).reshape(-1, C)
    t = target.reshape(-1)
    logp = jax.nn.log_softmax(x, axis=1)
    logpt = jnp.take_along_axis(logp, t[:, None], axis=1)[:, 0]
    pt = jnp.exp(logpt)
    if alpha is not None:
        if isinstance(alpha, (float, int)):
            alpha = [float(alpha), 1.0 - float(alpha)]
        at = jnp.asarray(alpha, jnp.float32)[t]
        logpt = logpt * at
    loss = -((1.0 - pt) ** gamma) * logpt
    return loss.mean() if size_average else loss.sum()


if __name__ == "__main__":
    key = jax.random.PRNGKey(0)
    k1, k2 = jax.random.split(key)

    N, C, H, W = 2, 4, 16, 16
    logits = jax.random.normal(k1, (N, C, H, W), jnp.float32)
    target = jax.random.randint(k2, (N, H, W), 0, C).astype(jnp.int32)

    # gamma=2, per-class alpha list, mean reduction.
    gamma, alpha = 2.0, [0.1, 0.2, 0.3, 0.4]
    loss = focal_loss(logits, target, gamma=gamma, alpha=alpha,
                      size_average=True)
    jax.block_until_ready(loss)
    loss_ref = focal_loss_reference(logits, target, gamma=gamma, alpha=alpha,
                                    size_average=True)
    np.testing.assert_allclose(np.asarray(loss), np.asarray(loss_ref),
                               atol=1e-5, rtol=1e-5)

    # Module defaults: gamma=0, no alpha; also exercise sum reduction.
    loss2 = focal_loss(logits, target, gamma=0, alpha=None,
                       size_average=False)
    jax.block_until_ready(loss2)
    loss2_ref = focal_loss_reference(logits, target, gamma=0, alpha=None,
                                     size_average=False)
    np.testing.assert_allclose(np.asarray(loss2), np.asarray(loss2_ref),
                               atol=1e-4, rtol=1e-5)

    print("KERNEL_OK")
</pallas_src>

<mosaic_0001>
module attributes {stable_mosaic.version = 11 : i64} {
  func.func @_focal_loss_kernel(%arg0: i32, %arg1: memref<4x512xf32, #tpu.memory_space<vmem>>, %arg2: memref<1x512xi32, #tpu.memory_space<vmem>>, %arg3: memref<4x1xf32, #tpu.memory_space<vmem>>, %arg4: memref<1x1xf32, #tpu.memory_space<vmem>>) attributes {dimension_semantics = [#tpu.dimension_semantics<arbitrary>], iteration_bounds = array<i64: 1>, scalar_prefetch = 0 : i64, scratch_operands = 0 : i64, tpu.core_type = #tpu.core_type<tc>, window_params = [{transform_indices = @transform_0, window_bounds = array<i64: 4, 512>}, {transform_indices = @transform_1, window_bounds = array<i64: 1, 512>}, {pipeline_mode = #tpu.pipeline_mode<synchronous>, transform_indices = @transform_2, window_bounds = array<i64: 4, 1>}, {pipeline_mode = #tpu.pipeline_mode<synchronous>, transform_indices = @transform_3, window_bounds = array<i64: 1, 1>}]} {
    %c0_i32 = arith.constant 0 : i32
    %0 = arith.cmpi eq, %arg0, %c0_i32 : i32
    %1 = arith.extui %0 : i1 to i32
    %c0_i32_0 = arith.constant 0 : i32
    %2 = arith.cmpi ne, %1, %c0_i32_0 : i32
    scf.if %2 {
      %cst_20 = arith.constant 0.000000e+00 : f32
      %55 = vector.broadcast %cst_20 : f32 to vector<1x1xf32>
      %c0_21 = arith.constant 0 : index
      %c0_22 = arith.constant 0 : index
      %56 = vector.load %arg4[%c0_21, %c0_22] : memref<1x1xf32, #tpu.memory_space<vmem>>, vector<1x1xf32>
      tpu.vector_store %arg4[%c0_21, %c0_22], %55 {strides = array<i32>} : memref<1x1xf32, #tpu.memory_space<vmem>>, vector<1x1xf32>,
    } else {
    }
    %c0 = arith.constant 0 : index
    %c0_1 = arith.constant 0 : index
    %3 = vector.load %arg1[%c0, %c0_1] : memref<4x512xf32, #tpu.memory_space<vmem>>, vector<4x512xf32>
    %c0_2 = arith.constant 0 : index
    %c0_3 = arith.constant 0 : index
    %4 = vector.load %arg2[%c0_2, %c0_3] : memref<1x512xi32, #tpu.memory_space<vmem>>, vector<1x512xi32>
    %cst = arith.constant dense<0xFF800000> : vector<512xf32>
    %5 = vector.multi_reduction <maximumf>, %3, %cst [0] : vector<4x512xf32> to vector<512xf32>
    %6 = vector.shape_cast %5 : vector<512xf32> to vector<1x512xf32>
    %7 = vector.broadcast %6 : vector<1x512xf32> to vector<4x512xf32>
    %8 = arith.subf %3, %7 : vector<4x512xf32>
    %9 = math.exp %8 : vector<4x512xf32>
    %cst_4 = arith.constant dense<0.000000e+00> : vector<512xf32>
    %10 = vector.multi_reduction <add>, %9, %cst_4 [0] : vector<4x512xf32> to vector<512xf32>
    %11 = vector.shape_cast %10 : vector<512xf32> to vector<1x512xf32>
    %12 = math.log %11 : vector<1x512xf32>
    %13 = vector.broadcast %12 : vector<1x512xf32> to vector<4x512xf32>
    %14 = arith.subf %8, %13 : vector<4x512xf32>
    %15 = tpu.iota {dimensions = array<i32: 0>} : vector<4x512xi32>
    %16 = vector.broadcast %4 : vector<1x512xi32> to vector<4x512xi32>
    %17 = arith.cmpi eq, %15, %16 : vector<4x512xi32>
    %18 = arith.extui %17 : vector<4x512xi1> to vector<4x512xi32>
    %19 = arith.sitofp %18 : vector<4x512xi32> to vector<4x512xf32>
    %20 = arith.mulf %14, %19 : vector<4x512xf32>
    %cst_5 = arith.constant dense<0.000000e+00> : vector<512xf32>
    %21 = vector.multi_reduction <add>, %20, %cst_5 [0] : vector<4x512xf32> to vector<512xf32>
    %22 = vector.shape_cast %21 : vector<512xf32> to vector<1x512xf32>
    %23 = math.exp %22 : vector<1x512xf32>
    %c0_6 = arith.constant 0 : index
    %c0_7 = arith.constant 0 : index
    %24 = vector.load %arg3[%c0_6, %c0_7] : memref<4x1xf32, #tpu.memory_space<vmem>>, vector<4x1xf32>
    %25 = vector.broadcast %24 : vector<4x1xf32> to vector<4x512xf32>
    %26 = arith.mulf %25, %19 : vector<4x512xf32>
    %cst_8 = arith.constant dense<0.000000e+00> : vector<512xf32>
    %27 = vector.multi_reduction <add>, %26, %cst_8 [0] : vector<4x512xf32> to vector<512xf32>
    %28 = vector.shape_cast %27 : vector<512xf32> to vector<1x512xf32>
    %29 = arith.mulf %22, %28 : vector<1x512xf32>
    %cst_9 = arith.constant 1.000000e+00 : f32
    %30 = vector.broadcast %cst_9 : f32 to vector<1x512xf32>
    %31 = arith.subf %30, %23 : vector<1x512xf32>
    %32 = arith.mulf %31, %31 : vector<1x512xf32>
    %cst_10 = arith.constant 0.000000e+00 : f32
    %33 = vector.broadcast %cst_10 : f32 to vector<1x512xf32>
    %34 = arith.subf %33, %32 : vector<1x512xf32>
    %35 = arith.mulf %34, %29 : vector<1x512xf32>
    %36 = tpu.iota {dimensions = array<i32: 1>} : vector<1x512xi32>
    %c512_i32 = arith.constant 512 : i32
    %37 = arith.muli %arg0, %c512_i32 : i32
    %38 = vector.broadcast %37 : i32 to vector<1x512xi32>
    %39 = arith.addi %36, %38 : vector<1x512xi32>
    %c512_i32_11 = arith.constant 512 : i32
    %40 = vector.broadcast %c512_i32_11 : i32 to vector<1x512xi32>
    %41 = arith.cmpi slt, %39, %40 : vector<1x512xi32>
    %cst_12 = arith.constant 0.000000e+00 : f32
    %42 = vector.broadcast %cst_12 : f32 to vector<1x512xf32>
    %43 = arith.select %41, %35, %42 : vector<1x512xi1>, vector<1x512xf32>
    %c0_13 = arith.constant 0 : index
    %c0_14 = arith.constant 0 : index
    %44 = vector.load %arg4[%c0_13, %c0_14] : memref<1x1xf32, #tpu.memory_space<vmem>>, vector<1x1xf32>
    %45 = vector.shape_cast %43 : vector<1x512xf32> to vector<1x1x512xf32>
    %cst_15 = arith.constant dense<0.000000e+00> : vector<1xf32>
    %46 = vector.multi_reduction <add>, %45, %cst_15 [1, 2] : vector<1x1x512xf32> to vector<1xf32>
    %47 = vector.shape_cast %46 : vector<1xf32> to vector<1x1x1xf32>
    %48 = vector.extract %47[0, 0, 0] : f32 from vector<1x1x1xf32>
    %49 = vector.broadcast %48 : f32 to vector<1x1xf32>
    %50 = arith.addf %44, %49 : vector<1x1xf32>
    %c0_16 = arith.constant 0 : index
    %c0_17 = arith.constant 0 : index
    %51 = vector.load %arg4[%c0_16, %c0_17] : memref<1x1xf32, #tpu.memory_space<vmem>>, vector<1x1xf32>
    tpu.vector_store %arg4[%c0_16, %c0_17], %50 {strides = array<i32>} : memref<1x1xf32, #tpu.memory_space<vmem>>, vector<1x1xf32>,
    %c0_i32_18 = arith.constant 0 : i32
    %52 = arith.cmpi eq, %arg0, %c0_i32_18 : i32
    %53 = arith.extui %52 : i1 to i32
    %c0_i32_19 = arith.constant 0 : i32
    %54 = arith.cmpi ne, %53, %c0_i32_19 : i32
    scf.if %54 {
      %c0_20 = arith.constant 0 : index
      %c0_21 = arith.constant 0 : index
      %55 = vector.load %arg4[%c0_20, %c0_21] : memref<1x1xf32, #tpu.memory_space<vmem>>, vector<1x1xf32>
      %cst_22 = arith.constant 0.001953125 : f32
      %56 = vector.broadcast %cst_22 : f32 to vector<1x1xf32>
      %57 = arith.mulf %55, %56 : vector<1x1xf32>
      %c0_23 = arith.constant 0 : index
      %c0_24 = arith.constant 0 : index
      %58 = vector.load %arg4[%c0_23, %c0_24] : memref<1x1xf32, #tpu.memory_space<vmem>>, vector<1x1xf32>
      tpu.vector_store %arg4[%c0_23, %c0_24], %57 {strides = array<i32>} : memref<1x1xf32, #tpu.memory_space<vmem>>, vector<1x1xf32>,
    } else {
    }
    return
  }
  func.func @transform_0(%arg0: i32) -> (i32, i32) {
    %c0_i32 = arith.constant 0 : i32
    %c0_i32_0 = arith.constant 0 : i32
    return %c0_i32, %arg0 : i32, i32
  }
  func.func @transform_1(%arg0: i32) -> (i32, i32) {
    %c0_i32 = arith.constant 0 : i32
    %c0_i32_0 = arith.constant 0 : i32
    return %c0_i32, %arg0 : i32, i32
  }
  func.func @transform_2(%arg0: i32) -> (i32, i32) {
    %c0_i32 = arith.constant 0 : i32
    %c0_i32_0 = arith.constant 0 : i32
    %c0_i32_1 = arith.constant 0 : i32
    return %c0_i32, %c0_i32_0 : i32, i32
  }
  func.func @transform_3(%arg0: i32) -> (i32, i32) {
    %c0_i32 = arith.constant 0 : i32
    %c0_i32_0 = arith.constant 0 : i32
    %c0_i32_1 = arith.constant 0 : i32
    return %c0_i32, %c0_i32_0 : i32, i32
  }
}

</mosaic_0001>

<bundles_post_ra>
// kernel: tpu_custom_call.1
= control target key start
LH: loop header
LB: loop body
LE: loop exit
PB: predicated region body
PF: predicated region fallthrough
CT: control target
= control target key end

     0   :  { %8 = vsyncpa [#allocation3], 0  ;;  %s598_s0 = inlined_call_operand.hbm [shape: f32[4,512], index: 0, kind: input, shape index: {}]   ;;  %s599_s1 = inlined_call_operand.hbm [shape: s32[1,512], index: 1, kind: input, shape index: {}]   ;;  %s600_s2 = inlined_call_operand.hbm [shape: f32[4,1], index: 2, kind: input, shape index: {}]   ;;  %s601_s3 = inlined_call_operand.hbm [shape: f32[1,1], index: 3, kind: output, shape index: {}]  }
   0x1   :  { %9 = vsyncpa [#allocation6], 0 }
   0x2   :  { %10 = vsyncpa [#allocation4], 0  ;;  %s492_s12 = smov [#allocation5]   ;;  %s493_s14 = smov [#allocation2]  }
   0x3   :  { %s27_s13 = sshll.u32 %s492_s12, 4  ;;  %s17_s15 = sshll.u32 %s493_s14, 4  ;;  %s28_s13 = int_to_ptr.vmem [resolvable:$true] %s27_s13  ;;  %s18_s15 = int_to_ptr.vmem [resolvable:$true] %s17_s15 }
   0x4   :  { %s398_s18 = scalar_lea.hbm %s599_s1, 64 }
   0x5   :  { %p399_p0 = scmp.ne.s32.totalorder %s599_s1, %s398_s18  ;;  %p402_p1 = scmp.lt.u32.totalorder %s398_s18, %s599_s1 }
   0x7   :  { %p404_p2 = pnand %p402_p1, %p399_p0 }
   0x9   :  { %407 = shalt.err (!%p404_p2)
}
   0xa   :  { %s408_s23 = scalar_lea.vmem %s28_s13, 64  ;;  %p413_p4 = scmp.lt.s32.totalorder %s28_s13, %s28_s13 }
   0xb   :  { %p409_p3 = scmp.ne.s32.totalorder %s28_s13, %s408_s23  ;;  %p414_p5 = scmp.lt.s32.totalorder %s408_s23, %s408_s23 }
   0xd   :  { %p415_p6 = por %p414_p5, %p413_p4 }
   0xf   :  { %p416_p7 = pnand %p415_p6, %p409_p3 }
  0x11   :  { %419 = shalt.err (!%p416_p7)
}
  0x12   :  { %30 = dma.hbm_to_vmem [thread:$0]  %s599_s1, 64, %s28_s13, [#allocation6]  }
  0x13   :  { %s420_s28 = scalar_lea.hbm %s598_s0, 256 }
  0x14   :  { %p421_p8 = scmp.ne.s32.totalorder %s598_s0, %s420_s28  ;;  %p424_p9 = scmp.lt.u32.totalorder %s420_s28, %s598_s0 }
  0x16   :  { %p426_p10 = pnand %p424_p9, %p421_p8 }
  0x18   :  { %429 = shalt.err (!%p426_p10)
}
  0x19   :  { %s430_s6 = scalar_lea.vmem %s18_s15, 256  ;;  %p435_p12 = scmp.lt.s32.totalorder %s18_s15, %s18_s15 }
  0x1a   :  { %p431_p11 = scmp.ne.s32.totalorder %s18_s15, %s430_s6  ;;  %p436_p13 = scmp.lt.s32.totalorder %s430_s6, %s430_s6 }
  0x1c   :  { %p437_p0 = por %p436_p13, %p435_p12 }
  0x1e   :  { %p438_p1 = pnand %p437_p0, %p431_p11 }
  0x20   :  { %441 = shalt.err (!%p438_p1)
}
  0x21   :  { %20 = dma.hbm_to_vmem [thread:$0]  %s598_s0, 256, %s18_s15, [#allocation3]  }
  0x22   :  { %s494_s8 = smov [#allocation7]   ;;  %s442_s12 = scalar_lea.hbm %s600_s2, 64 }
  0x23   :  { %s37_s9 = sshll.u32 %s494_s8, 4  ;;  %p443_p2 = scmp.ne.s32.totalorder %s600_s2, %s442_s12  ;;  %s38_s9 = int_to_ptr.vmem [resolvable:$true] %s37_s9 }
  0x24   :  { %p446_p3 = scmp.lt.u32.totalorder %s442_s12, %s600_s2 }
  0x26   :  { %p448_p4 = pnand %p446_p3, %p443_p2 }
  0x28   :  { %451 = shalt.err (!%p448_p4)
}
  0x29   :  { %s452_s18 = scalar_lea.vmem %s38_s9, 64  ;;  %p457_p6 = scmp.lt.s32.totalorder %s38_s9, %s38_s9 }
  0x2a   :  { %p453_p5 = scmp.ne.s32.totalorder %s38_s9, %s452_s18  ;;  %p458_p7 = scmp.lt.s32.totalorder %s452_s18, %s452_s18 }
  0x2c   :  { %p459_p8 = por %p458_p7, %p457_p6 }
  0x2e   :  { %p460_p9 = pnand %p459_p8, %p453_p5 }
  0x30   :  { %463 = shalt.err (!%p460_p9)
}
  0x31   :  { %40 = dma.hbm_to_vmem [thread:$0]  %s600_s2, 64, %s38_s9, [#allocation6]  }
  0x32   :  { %486 = dma.done.wait [#allocation3], 256  }
  0x33   :  { %487 = vsyncadd [#allocation3], 4294967040 }
  0x34   :  { %488 = dma.done.wait [#allocation6], 128  }
  0x35   :  { %489 = vsyncadd [#allocation6], 4294967168  ;;  %v495_v0 = vmov 0   ;;  %vm65_vm0 = vcmask 1043456   ;;  %v242_v1 = vld [vmem:[#allocation7] sm:$0xf] }
  0x36   :  { %375 = vset.pattern.permute.xlu0 %v495_v0  ;;  %v56_v2 = vld [vmem:[#allocation2] sm:$0xff]  ;;  %v57_v3 = vld [vmem:[#allocation2 + $0x8] sm:$0xff]  ;;  %vm320_vm5 = vcmask 1040384   ;;  %vm54_vm6 = vcmask 0   ;;  %s497_s19 = smov [#allocation8]  }
  0x37   :  { %245 = vperm.xlu0 %375, %v242_v1   ;;  %v61_v4 = vcombine.high %v56_v2, %v56_v2  ;;  %v62_v5 = vcombine.high %v57_v3, %v57_v3  ;;  %v66_v6 = vsel %vm65_vm0, %v56_v2, -inf  ;;  %v80_v7 = vsel %vm65_vm0, %v57_v3, -inf  ;;  %s353_s20 = sshll.u32 %s497_s19, 4  ;;  %s354_s20 = int_to_ptr.vmem [resolvable:$true] %s353_s20 }
  0x38   :  { %v67_v8 = vrot.slane %v66_v6, 4  ;;  %v81_v9 = vrot.slane %v80_v7, 4  ;;  %s464_s21 = scalar_lea.vmem %s354_s20, 16  ;;  %s468_s22 = scalar_lea.vmem %s354_s20, 32 }
  0x39   :  { %v73_v10 = vsel %vm65_vm0, %v61_v4, -inf  ;;  %v87_v11 = vsel %vm65_vm0, %v62_v5, -inf  ;;  %p465_p10 = scmp.ne.s32.totalorder %s354_s20, %s464_s21  ;;  %p469_p11 = scmp.lt.s32.totalorder %s354_s20, %s354_s20 }
  0x3a   :  { %v68_v12 = vmax.f32 %v66_v6, %v67_v8  ;;  %v74_v13 = vrot.slane %v73_v10, 4  ;;  %v82_v14 = vmax.f32 %v80_v7, %v81_v9  ;;  %v88_v15 = vrot.slane %v87_v11, 4  ;;  %p470_p12 = scmp.lt.s32.totalorder %s468_s22, %s464_s21 }
  0x3b   :  { %v160_v8 = vlaneseq }
  0x3c   :  { %v69_v16 = vrot.slane %v68_v12, 2  ;;  %v75_v17 = vmax.f32 %v73_v10, %v74_v13  ;;  %v83_v18 = vrot.slane %v82_v14, 2  ;;  %v89_v19 = vmax.f32 %v87_v11, %v88_v15  ;;  %p471_p13 = por %p470_p12, %p469_p11 }
  0x3d   :  { %v161_v9 = vshrl.u32 %v160_v8, 7 }
  0x3e   :  { %v70_v20 = vmax.f32 %v68_v12, %v69_v16  ;;  %v76_v21 = vrot.slane %v75_v17, 2  ;;  %v84_v22 = vmax.f32 %v82_v14, %v83_v18  ;;  %v90_v23 = vrot.slane %v89_v19, 2  ;;  %v58_v12 = vld [vmem:[#allocation5] sm:$0xf]  ;;  %p472_p0 = pnand %p471_p13, %p465_p10 }
  0x3f   :  { %v164_v10 = vsub.s32 0, %v161_v9  ;;  %v168_v11 = vsub.s32 1, %v161_v9  ;;  %v172_v14 = vsub.s32 2, %v161_v9  ;;  %v176_v15 = vsub.s32 3, %v161_v9 }
  0x40   :  { %v71_v24 = vrot.slane %v70_v20, 1  ;;  %v77_v25 = vmax.f32 %v75_v17, %v76_v21  ;;  %v85_v26 = vrot.slane %v84_v22, 1  ;;  %v91_v27 = vmax.f32 %v89_v19, %v90_v23 }
  0x41   :  { %v165_v18 = vrot.slane %v58_v12, %v164_v10  ;;  %v169_v19 = vrot.slane %v58_v12, %v168_v11  ;;  %v173_v23 = vrot.slane %v58_v12, %v172_v14 }
  0x42   :  { %v72_v28 = vmax.f32 %v70_v20, %v71_v24  ;;  %v78_v29 = vrot.slane %v77_v25, 1  ;;  %v86_v30 = vmax.f32 %v84_v22, %v85_v26  ;;  %v92_v31 = vrot.slane %v91_v27, 1 }
  0x43   :  { %v177_v24 = vrot.slane %v58_v12, %v176_v15  ;;  %vm178_vm1 = vcmp.eq.s32.totalorder %v161_v9, %v165_v18  ;;  %vm179_vm2 = vcmp.eq.s32.totalorder %v161_v9, %v169_v19  ;;  %vm180_vm3 = vcmp.eq.s32.totalorder %v161_v9, %v173_v23 }
  0x44   :  { %v79_v32 = vmax.f32 %v77_v25, %v78_v29  ;;  %v93_v33 = vmax.f32 %v91_v27, %v92_v31 }
  0x45   :  { %vm181_vm4 = vcmp.eq.s32.totalorder %v161_v9, %v177_v24 }
  0x46   :  { %v98_v34 = vcombine.low %v72_v28, %v79_v32  ;;  %v99_v35 = vcombine.low %v86_v30, %v93_v33  ;;  %v496_v28 = vmov 0.0  }
  0x47   :  { %v363_v29 = vsel %vm178_vm1, 1.0, %v496_v28  ;;  %v364_v30 = vsel %vm179_vm2, 1.0, %v496_v28  ;;  %v365_v32 = vsel %vm180_vm3, 1.0, %v496_v28  ;;  %v366_v33 = vsel %vm181_vm4, 1.0, %v496_v28  ;;  %55 = vst.msk [vmem:[#allocation8] sm:$0x1] %vm54_vm6, %v496_v28 }
  0x48   :  { %v558_v36 = vsub.f32 %v56_v2, %v98_v34  ;;  %v560_v37 = vsub.f32 %v57_v3, %v99_v35  ;;  %v194_v35 = vcombine.low %v363_v29, %v364_v30 }
  0x4a   :  { %v104_v38 = vmul.f32 1.442695, %v558_v36  ;;  %v106_v39 = vmul.f32 1.442695, %v560_v37 }
  0x4c   :  { %378 = vpow2.f32 %v104_v38 }
  0x4d   :  { %380 = vpow2.f32 %v106_v39  ;;  %v195_v39 = vcombine.low %v365_v32, %v366_v33 }
  0x56   :  { %v379_v40 = vpop.eup %378 }
  0x57   :  { %v381_v41 = vpop.eup %380  ;;  %v110_v42 = vcombine.high %v379_v40, %v379_v40  ;;  %v114_v43 = vsel %vm65_vm0, %v379_v40, 0.0 }
  0x58   :  { %v111_v44 = vcombine.high %v381_v41, %v381_v41  ;;  %v115_v45 = vrot.slane %v114_v43, 4  ;;  %v128_v46 = vsel %vm65_vm0, %v381_v41, 0.0 }
  0x59   :  { %v121_v47 = vsel %vm65_vm0, %v110_v42, 0.0  ;;  %v129_v48 = vrot.slane %v128_v46, 4 }
  0x5a   :  { %v116_v49 = vadd.f32 %v115_v45, %v114_v43  ;;  %v122_v50 = vrot.slane %v121_v47, 4  ;;  %v135_v51 = vsel %vm65_vm0, %v111_v44, 0.0 }
  0x5b   :  { %v130_v52 = vadd.f32 %v129_v48, %v128_v46  ;;  %v136_v53 = vrot.slane %v135_v51, 4 }
  0x5c   :  { %v123_v54 = vadd.f32 %v122_v50, %v121_v47  ;;  %v117_v55 = vrot.slane %v116_v49, 2 }
  0x5d   :  { %v137_v56 = vadd.f32 %v136_v53, %v135_v51  ;;  %v131_v58 = vrot.slane %v130_v52, 2 }
  0x5e   :  { %v124_v57 = vrot.slane %v123_v54, 2  ;;  %v118_v60 = vadd.f32 %v117_v55, %v116_v49 }
  0x5f   :  { %v138_v59 = vrot.slane %v137_v56, 2  ;;  %v132_v62 = vadd.f32 %v131_v58, %v130_v52 }
  0x60   :  { %v125_v61 = vadd.f32 %v124_v57, %v123_v54  ;;  %v119_v0 = vrot.slane %v118_v60, 1 }
  0x61   :  { %v139_v63 = vadd.f32 %v138_v59, %v137_v56  ;;  %v133_v2 = vrot.slane %v132_v62, 1 }
  0x62   :  { %v126_v1 = vrot.slane %v125_v61, 1  ;;  %v120_v4 = vadd.f32 %v119_v0, %v118_v60 }
  0x63   :  { %v140_v3 = vrot.slane %v139_v63, 1  ;;  %v134_v6 = vadd.f32 %v133_v2, %v132_v62 }
  0x64   :  { %v127_v5 = vadd.f32 %v126_v1, %v125_v61  ;;  %382 = vlog2.f32 %v120_v4 }
  0x65   :  { %v141_v7 = vadd.f32 %v140_v3, %v139_v63 }
  0x66   :  { %384 = vlog2.f32 %v127_v5 }
  0x67   :  { %386 = vlog2.f32 %v134_v6 }
  0x68   :  { %388 = vlog2.f32 %v141_v7 }
  0x6e   :  { %v383_v13 = vpop.eup %382 }
  0x6f   :  { %v143_v21 = vmul.f32 0.6931472, %v383_v13 }
  0x70   :  { %v385_v16 = vpop.eup %384 }
  0x71   :  { %v387_v17 = vpop.eup %386  ;;  %v145_v22 = vmul.f32 0.6931472, %v385_v16 }
  0x72   :  { %v389_v20 = vpop.eup %388  ;;  %v147_v25 = vmul.f32 0.6931472, %v387_v17 }
  0x73   :  { %v149_v26 = vmul.f32 0.6931472, %v389_v20  ;;  %v154_v27 = vcombine.low %v143_v21, %v145_v22 }
  0x75   :  { %v155_v31 = vcombine.low %v147_v25, %v149_v26  ;;  %v158_v34 = vsub.f32 %v558_v36, %v154_v27 }
  0x77   :  { %v159_v38 = vsub.f32 %v560_v37, %v155_v31  ;;  %v198_v40 = vmul.f32 %v194_v35, %v158_v34 }
  0x79   :  { %v199_v41 = vmul.f32 %v195_v39, %v159_v38  ;;  %v202_v42 = vcombine.high %v198_v40, %v198_v40  ;;  %v206_v44 = vsel %vm65_vm0, %v198_v40, 0.0 }
  0x7a   :  { %v207_v47 = vrot.slane %v206_v44, 4 }
  0x7b   :  { %v203_v43 = vcombine.high %v199_v41, %v199_v41  ;;  %v220_v45 = vsel %vm65_vm0, %v199_v41, 0.0  ;;  %v213_v46 = vsel %vm65_vm0, %v202_v42, 0.0 }
  0x7c   :  { %v221_v48 = vrot.slane %v220_v45, 4  ;;  %v214_v50 = vrot.slane %v213_v46, 4  ;;  %v208_v36 = vadd.f32 %v207_v47, %v206_v44 }
  0x7d   :  { %v227_v49 = vsel %vm65_vm0, %v203_v43, 0.0 }
  0x7e   :  { %v228_v51 = vrot.slane %v227_v49, 4  ;;  %v222_v52 = vadd.f32 %v221_v48, %v220_v45  ;;  %v215_v37 = vadd.f32 %v214_v50, %v213_v46  ;;  %v209_v53 = vrot.slane %v208_v36, 2 }
  0x80   :  { %v229_v54 = vadd.f32 %v228_v51, %v227_v49  ;;  %v223_v55 = vrot.slane %v222_v52, 2  ;;  %v216_v56 = vrot.slane %v215_v37, 2  ;;  %v210_v57 = vadd.f32 %v209_v53, %v208_v36 }
  0x82   :  { %v230_v58 = vrot.slane %v229_v54, 2  ;;  %v224_v59 = vadd.f32 %v223_v55, %v222_v52  ;;  %v217_v60 = vadd.f32 %v216_v56, %v215_v37  ;;  %v211_v61 = vrot.slane %v210_v57, 1 }
  0x84   :  { %v231_v62 = vadd.f32 %v230_v58, %v229_v54  ;;  %v225_v63 = vrot.slane %v224_v59, 1  ;;  %v218_v0 = vrot.slane %v217_v60, 1  ;;  %v212_v1 = vadd.f32 %v211_v61, %v210_v57 }
  0x86   :  { %v232_v2 = vrot.slane %v231_v62, 1  ;;  %v226_v3 = vadd.f32 %v225_v63, %v224_v59  ;;  %v219_v4 = vadd.f32 %v218_v0, %v217_v60  ;;  %v234_v6 = vmul.f32 1.442695, %v212_v1 }
  0x88   :  { %v233_v5 = vadd.f32 %v232_v2, %v231_v62  ;;  %v238_v7 = vmul.f32 1.442695, %v226_v3  ;;  %v236_v8 = vmul.f32 1.442695, %v219_v4  ;;  %390 = vpow2.f32 %v234_v6 }
  0x8a   :  { %v240_v9 = vmul.f32 1.442695, %v233_v5  ;;  %392 = vpow2.f32 %v238_v7 }
  0x8b   :  { %394 = vpow2.f32 %v236_v8 }
  0x8c   :  { %396 = vpow2.f32 %v240_v9 }
  0x92   :  { %v391_v10 = vpop.eup %390 }
  0x93   :  { %v284_v27 = vsub.f32 1.0, %v391_v10 }
  0x94   :  { %v393_v12 = vpop.eup %392 }
  0x95   :  { %v395_v17 = vpop.eup %394  ;;  %v288_v42 = vmul.f32 %v284_v27, %v284_v27 }
  0x96   :  { %v397_v22 = vpop.eup %396  ;;  %v285_v31 = vsub.f32 1.0, %v395_v17 }
  0x97   :  { %v287_v35 = vsub.f32 1.0, %v397_v22  ;;  %v292_v37 = vsub.f32 0.0, %v288_v42 }
  0x98   :  { %v289_v43 = vmul.f32 %v285_v31, %v285_v31 }
  0x99   :  { %v291_v49 = vmul.f32 %v287_v35, %v287_v35 }
  0x9a   :  { %v293_v53 = vsub.f32 0.0, %v289_v43 }
  0x9b   :  { %v295_v59 = vsub.f32 0.0, %v291_v49 }
  0xb6   :  { %v246_v11 = vpop.permute.xlu0 %245 }
  0xb7   :  { %v248_v13 = vmul.f32 %v363_v29, %v246_v11  ;;  %v249_v14 = vmul.f32 %v364_v30, %v246_v11  ;;  %v250_v15 = vmul.f32 %v365_v32, %v246_v11  ;;  %v251_v16 = vmul.f32 %v366_v33, %v246_v11 }
  0xb8   :  { %v286_v29 = vsub.f32 1.0, %v393_v12 }
  0xb9   :  { %v252_v18 = vsel %vm65_vm0, %v248_v13, 0.0  ;;  %v259_v19 = vsel %vm65_vm0, %v249_v14, 0.0  ;;  %v266_v20 = vsel %vm65_vm0, %v250_v15, 0.0  ;;  %v273_v21 = vsel %vm65_vm0, %v251_v16, 0.0 }
  0xba   :  { %v253_v23 = vrot.slane %v252_v18, 4  ;;  %v260_v24 = vrot.slane %v259_v19, 4  ;;  %v267_v25 = vrot.slane %v266_v20, 4  ;;  %v274_v26 = vrot.slane %v273_v21, 4 }
  0xbb   :  { %v290_v44 = vmul.f32 %v286_v29, %v286_v29 }
  0xbc   :  { %v254_v30 = vadd.f32 %v253_v23, %v252_v18  ;;  %v261_v32 = vadd.f32 %v260_v24, %v259_v19  ;;  %v268_v33 = vadd.f32 %v267_v25, %v266_v20  ;;  %v275_v34 = vadd.f32 %v274_v26, %v273_v21  ;;  %v319_v18 = vld [vmem:[#allocation8] sm:$0x1] }
  0xbd   :  { %v294_v54 = vsub.f32 0.0, %v290_v44 }
  0xbe   :  { %v255_v38 = vrot.slane %v254_v30, 2  ;;  %v262_v39 = vrot.slane %v261_v32, 2  ;;  %v269_v40 = vrot.slane %v268_v33, 2  ;;  %v276_v41 = vrot.slane %v275_v34, 2 }
  0xc0   :  { %v256_v45 = vadd.f32 %v255_v38, %v254_v30  ;;  %v263_v46 = vadd.f32 %v262_v39, %v261_v32  ;;  %v270_v47 = vadd.f32 %v269_v40, %v268_v33  ;;  %v277_v48 = vadd.f32 %v276_v41, %v275_v34 }
  0xc2   :  { %v257_v50 = vrot.slane %v256_v45, 1  ;;  %v264_v36 = vrot.slane %v263_v46, 1  ;;  %v271_v51 = vrot.slane %v270_v47, 1  ;;  %v278_v52 = vrot.slane %v277_v48, 1 }
  0xc4   :  { %v258_v55 = vadd.f32 %v257_v50, %v256_v45  ;;  %v265_v56 = vadd.f32 %v264_v36, %v263_v46  ;;  %v272_v57 = vadd.f32 %v271_v51, %v270_v47  ;;  %v279_v58 = vadd.f32 %v278_v52, %v277_v48 }
  0xc6   :  { %v280_v60 = vmul.f32 %v258_v55, %v212_v1  ;;  %v281_v61 = vmul.f32 %v265_v56, %v219_v4  ;;  %v282_v62 = vmul.f32 %v272_v57, %v226_v3  ;;  %v283_v63 = vmul.f32 %v279_v58, %v233_v5 }
  0xc8   :  { %v296_v0 = vmul.f32 %v292_v37, %v280_v60  ;;  %v297_v2 = vmul.f32 %v293_v53, %v281_v61  ;;  %v298_v6 = vmul.f32 %v294_v54, %v282_v62  ;;  %v299_v7 = vmul.f32 %v295_v59, %v283_v63 }
  0xca   :  { %v321_v8 = vsel %vm320_vm5, %v296_v0, 0.0  ;;  %v322_v9 = vsel %vm320_vm5, %v297_v2, 0.0  ;;  %v324_v11 = vsel %vm320_vm5, %v298_v6, 0.0  ;;  %v326_v13 = vsel %vm320_vm5, %v299_v7, 0.0 }
  0xcb   :  { %v323_v10 = vadd.f32 %v322_v9, %v321_v8 }
  0xcd   :  { %v325_v12 = vadd.f32 %v324_v11, %v323_v10 }
  0xcf   :  { %v327_v14 = vadd.f32 %v326_v13, %v325_v12 }
  0xd1   :  { %328 = vadd.xlane.f32.xlu0 %v327_v14 }
 0x15e   :  { %v329_v1 = vpop.xlane.xlu0 %328 }
 0x15f   :  { %v330_v3 = vrot.slane %v329_v1, 4 }
 0x161   :  { %v331_v4 = vadd.f32 %v330_v3, %v329_v1 }
 0x163   :  { %v332_v5 = vrot.slane %v331_v4, 2 }
 0x165   :  { %v333_v15 = vadd.f32 %v332_v5, %v331_v4 }
 0x167   :  { %v334_v16 = vrot.slane %v333_v15, 1 }
 0x169   :  { %v335_v17 = vadd.f32 %v334_v16, %v333_v15 }
 0x16b   :  { %367 = vpush %v335_v17 }
 0x19c   :  { %s368_s2 = spop %367 }
 0x19d   :  { %v337_v19 = vstv %s368_s2 }
 0x19e   :  { %v338_v20 = vadd.f32 %v337_v19, %v319_v18 }
 0x1a0   :  { %340 = vst.msk [vmem:[#allocation8] sm:$0x1] %vm54_vm6, %v338_v20 }
 0x1a7   :  { %v344_v21 = vld [vmem:[#allocation8] sm:$0x1] }
 0x1a8   :  { %v345_v22 = vmul.f32 0.001953125, %v344_v21 }
 0x1aa   :  { %346 = vst.msk [vmem:[#allocation8] sm:$0x1] %vm54_vm6, %v345_v22 }
 0x1ab   :  { %475 = shalt.err (!%p472_p0)
}
 0x1ac   :  { %s476_s25 = scalar_lea.hbm %s601_s3, 16 }
 0x1ad   :  { %p477_p1 = scmp.ne.s32.totalorder %s601_s3, %s476_s25  ;;  %p480_p2 = scmp.lt.u32.totalorder %s476_s25, %s601_s3 }
 0x1af   :  { %p482_p3 = pnand %p480_p2, %p477_p1 }
 0x1b1   :  { %485 = shalt.err (!%p482_p3)
}
 0x1b2   :  { %356 = dma.vmem_to_hbm [thread:$0]  %s354_s20, 16, %s601_s3, [#allocation4]  }
 0x1b3   :  { %490 = dma.done.wait [#allocation4], 16  }
 0x1b4   :  { %491 = vsyncadd [#allocation4], 4294967280 }
 0x1b5   :  { %360 = vsyncpa [#allocation3], 1 }
 0x1b6   :  { %361 = vsyncpa [#allocation6], 1 }
 0x1b7   :  { %362 = vsyncpa [#allocation4], 1 }

</bundles_post_ra>
